<compile_context>
chip_gen: v7x
topology: tpu7x:2x2x1
jax: 0.10.0
libtpu: 0.0.40
codegen_flags: <defaults>
</compile_context>

<pallas_src>
import jax
import jax.numpy as jnp
from jax.experimental import pallas as pl
from jax.experimental.pallas import tpu as pltpu

LOG_2PI = 1.8378770664093453  # log(2*pi)


def _round_up(a, b):
    return ((a + b - 1) // b) * b


def _cdiv(a, b):
    return -(-a // b)


def _make_flow_kernel(c, hw):
    """Kernel closure over the static channel count / spatial size.

    x_ref  : VMEM (nb, C*HW)  input block (natural NCHW-flattened layout)
    a_ref  : SMEM (C*C,)      fused affine matrix, row-major
    d_ref  : SMEM (C,)        fused affine offset
    off_ref: SMEM (1,)        2*logdet - 0.5*C*HW*log(2*pi)
    z_ref  : VMEM (nb, C*HW)  output block
    lp_ref : VMEM (nb, 1)     per-sample logprob + logdet
    """

    def kernel(x_ref, a_ref, d_ref, off_ref, z_ref, lp_ref):
        # Hoist the per-channel loads (lane slices are 128-aligned: hw == 256).
        xs = [x_ref[:, ci * hw:(ci + 1) * hw] for ci in range(c)]

        sq_sum = None
        for o in range(c):  # static python loop, C == 4
            acc = xs[0] * a_ref[o * c + 0]
            for ci in range(1, c):
                acc = acc + xs[ci] * a_ref[o * c + ci]
            z_o = acc + d_ref[o]
            z_ref[:, o * hw:(o + 1) * hw] = z_o
            # Reduce over the lane (HW) axis immediately: (nb, 1) partial.
            part = jnp.sum(z_o * z_o, axis=-1, keepdims=True)
            sq_sum = part if sq_sum is None else sq_sum + part

        lp_ref[...] = off_ref[0] - 0.5 * sq_sum

    return kernel


def flow_sequential_forward(x_nchw, params):
    """Returns (output in NCHW, logprob + logdet per sample)."""
    b1, ls1, w, b2, ls2 = params
    n, c, h, wd = x_nchw.shape
    hw = h * wd
    f32 = jnp.float32

    # ---- fold the three layers into one affine transform (wrapper-side) ----
    s1 = jnp.exp(ls1.astype(f32))                       # (C,)
    s2 = jnp.exp(ls2.astype(f32))                       # (C,)
    wf = w.astype(f32)
    a_mat = (s2[:, None] * wf) * s1[None, :]            # (C, C)
    d_vec = -(a_mat @ b1.astype(f32) + s2 * b2.astype(f32))   # (C,)

    # logdet is data-independent; reference double-adds every layer logdet.
    _, ldw = jnp.linalg.slogdet(wf)
    logdet = 2.0 * hw * (jnp.sum(ls1.astype(f32)) + ldw + jnp.sum(ls2.astype(f32)))
    off = logdet - 0.5 * c * hw * LOG_2PI

    a_flat = a_mat.reshape(c * c).astype(f32)
    d_vec = d_vec.astype(f32)
    off_arr = jnp.reshape(off, (1,)).astype(f32)

    # ---- tiling: samples on the sublane axis, C*HW on the lane axis ----
    chw = c * hw                                        # 1024 (multiple of 128)
    nb_max = 1024                                       # 4 MiB f32 x block
    n8 = _round_up(n, 8)
    num_tiles = max(2, _cdiv(n8, nb_max))               # >=2 for v7x megacore
    if num_tiles % 2:
        num_tiles += 1
    nb = _round_up(_cdiv(n, num_tiles), 8)              # samples per grid step
    n_pad = nb * num_tiles

    # Free (contiguous) reshape: NCHW -> (N, C*HW).  No transpose.
    x2d = x_nchw.reshape(n, chw).astype(f32)
    if n_pad != n:
        x2d = jnp.pad(x2d, ((0, n_pad - n), (0, 0)))

    # VMEM budget: double-buffered x and z blocks + headroom.
    block_bytes = nb * chw * 4
    vmem_bytes = 4 * block_bytes + (8 << 20)

    smem = pl.BlockSpec(memory_space=pltpu.MemorySpace.SMEM)

    z, lp = pl.pallas_call(
        _make_flow_kernel(c, hw),
        out_shape=(
            jax.ShapeDtypeStruct((n_pad, chw), f32),
            jax.ShapeDtypeStruct((n_pad, 1), f32),
        ),
        grid=(num_tiles,),
        in_specs=[
            pl.BlockSpec((nb, chw), lambda i: (i, 0)),   # x
            smem,                                        # A (flattened)
            smem,                                        # d
            smem,                                        # off
        ],
        out_specs=(
            pl.BlockSpec((nb, chw), lambda i: (i, 0)),   # z
            pl.BlockSpec((nb, 1), lambda i: (i, 0)),     # lp (per-sample)
        ),
        compiler_params=pltpu.CompilerParams(
            dimension_semantics=("parallel",),
            vmem_limit_bytes=vmem_bytes),
    )(x2d, a_flat, d_vec, off_arr)

    # Free reshape back to NCHW.
    out_nchw = z[:n].reshape(n, c, h, wd)
    log_prob_plus_logdet = lp.reshape(n_pad)[:n]
    return out_nchw, log_prob_plus_logdet


def _reference(x_nchw, params):
    """Plain-JAX reference reproducing the (buggy, double-add) PyTorch forward,
    computed layer-by-layer (unfused) for an independent check."""
    b1, ls1, w, b2, ls2 = params
    n, c, h, wd = x_nchw.shape
    hw = h * wd
    x = x_nchw.reshape(n, c, hw).astype(jnp.float32)
    t = (x - b1[None, :, None]) * jnp.exp(ls1)[None, :, None]
    ld0 = hw * jnp.sum(ls1)
    y = jnp.einsum("oc,ncp->nop", w, t)
    _, ldw = jnp.linalg.slogdet(w)
    ld1 = hw * ldw
    z = (y - b2[None, :, None]) * jnp.exp(ls2)[None, :, None]
    ld2 = hw * jnp.sum(ls2)
    logdet = 2.0 * (ld0 + ld1 + ld2)
    logprob = jnp.sum(-0.5 * (z * z + LOG_2PI), axis=(1, 2))
    return z.reshape(n, c, h, wd), logprob + logdet


if __name__ == "__main__":
    key = jax.random.PRNGKey(0)
    k_x, k_b1, k_s1, k_w, k_b2, k_s2 = jax.random.split(key, 6)

    N, C, H, W = 2, 4, 16, 16
    x = jax.random.normal(k_x, (N, C, H, W), dtype=jnp.float32)

    # Deterministic parameter init.
    b1 = 0.1 * jax.random.normal(k_b1, (C,), dtype=jnp.float32)
    ls1 = 0.05 * jax.random.normal(k_s1, (C,), dtype=jnp.float32)
    w = jnp.eye(C, dtype=jnp.float32) + 0.1 * jax.random.normal(
        k_w, (C, C), dtype=jnp.float32)
    b2 = 0.1 * jax.random.normal(k_b2, (C,), dtype=jnp.float32)
    ls2 = 0.05 * jax.random.normal(k_s2, (C,), dtype=jnp.float32)
    params = (b1, ls1, w, b2, ls2)

    out, lp = flow_sequential_forward(x, params)
    jax.block_until_ready((out, lp))

    out_ref, lp_ref = _reference(x, params)
    assert jnp.allclose(out, out_ref, atol=1e-4, rtol=1e-4)
    assert jnp.allclose(lp, lp_ref, atol=1e-2, rtol=1e-4)

    print("KERNEL_OK")
</pallas_src>

<mosaic_0001>
module attributes {stable_mosaic.version = 11 : i64} {
  func.func @kernel(%arg0: i32, %arg1: memref<8x1024xf32, #tpu.memory_space<vmem>>, %arg2: memref<16xf32, #tpu.memory_space<smem>>, %arg3: memref<4xf32, #tpu.memory_space<smem>>, %arg4: memref<1xf32, #tpu.memory_space<smem>>, %arg5: memref<8x1024xf32, #tpu.memory_space<vmem>>, %arg6: memref<8x1xf32, #tpu.memory_space<vmem>>) attributes {dimension_semantics = [#tpu.dimension_semantics<parallel>], iteration_bounds = array<i64: 2>, scalar_prefetch = 0 : i64, scratch_operands = 0 : i64, tpu.core_type = #tpu.core_type<tc>, window_params = [{transform_indices = @transform_0, window_bounds = array<i64: 8, 1024>}, {transform_indices = @transform_1, window_bounds = array<i64: 16>}, {transform_indices = @transform_2, window_bounds = array<i64: 4>}, {transform_indices = @transform_3, window_bounds = array<i64: 1>}, {transform_indices = @transform_4, window_bounds = array<i64: 8, 1024>}, {transform_indices = @transform_5, window_bounds = array<i64: 8, 1>}]} {
    %c0 = arith.constant 0 : index
    %c0_0 = arith.constant 0 : index
    %0 = vector.load %arg1[%c0, %c0_0] : memref<8x1024xf32, #tpu.memory_space<vmem>>, vector<8x256xf32>
    %c0_1 = arith.constant 0 : index
    %c256 = arith.constant 256 : index
    %1 = vector.load %arg1[%c0_1, %c256] : memref<8x1024xf32, #tpu.memory_space<vmem>>, vector<8x256xf32>
    %c0_2 = arith.constant 0 : index
    %c512 = arith.constant 512 : index
    %2 = vector.load %arg1[%c0_2, %c512] : memref<8x1024xf32, #tpu.memory_space<vmem>>, vector<8x256xf32>
    %c0_3 = arith.constant 0 : index
    %c768 = arith.constant 768 : index
    %3 = vector.load %arg1[%c0_3, %c768] : memref<8x1024xf32, #tpu.memory_space<vmem>>, vector<8x256xf32>
    %c0_4 = arith.constant 0 : index
    %4 = memref.load %arg2[%c0_4] : memref<16xf32, #tpu.memory_space<smem>>
    %5 = vector.broadcast %4 : f32 to vector<8x256xf32>
    %6 = arith.mulf %0, %5 : vector<8x256xf32>
    %c1 = arith.constant 1 : index
    %7 = memref.load %arg2[%c1] : memref<16xf32, #tpu.memory_space<smem>>
    %8 = vector.broadcast %7 : f32 to vector<8x256xf32>
    %9 = arith.mulf %1, %8 : vector<8x256xf32>
    %10 = arith.addf %6, %9 : vector<8x256xf32>
    %c2 = arith.constant 2 : index
    %11 = memref.load %arg2[%c2] : memref<16xf32, #tpu.memory_space<smem>>
    %12 = vector.broadcast %11 : f32 to vector<8x256xf32>
    %13 = arith.mulf %2, %12 : vector<8x256xf32>
    %14 = arith.addf %10, %13 : vector<8x256xf32>
    %c3 = arith.constant 3 : index
    %15 = memref.load %arg2[%c3] : memref<16xf32, #tpu.memory_space<smem>>
    %16 = vector.broadcast %15 : f32 to vector<8x256xf32>
    %17 = arith.mulf %3, %16 : vector<8x256xf32>
    %18 = arith.addf %14, %17 : vector<8x256xf32>
    %c0_5 = arith.constant 0 : index
    %19 = memref.load %arg3[%c0_5] : memref<4xf32, #tpu.memory_space<smem>>
    %20 = vector.broadcast %19 : f32 to vector<8x256xf32>
    %21 = arith.addf %18, %20 : vector<8x256xf32>
    %c0_6 = arith.constant 0 : index
    %c0_7 = arith.constant 0 : index
    %22 = vector.load %arg5[%c0_6, %c0_7] : memref<8x1024xf32, #tpu.memory_space<vmem>>, vector<8x256xf32>
    tpu.vector_store %arg5[%c0_6, %c0_7], %21 {strides = array<i32>} : memref<8x1024xf32, #tpu.memory_space<vmem>>, vector<8x256xf32>,
    %23 = arith.mulf %21, %21 : vector<8x256xf32>
    %cst = arith.constant dense<0.000000e+00> : vector<8xf32>
    %24 = vector.multi_reduction <add>, %23, %cst [1] : vector<8x256xf32> to vector<8xf32>
    %25 = vector.shape_cast %24 : vector<8xf32> to vector<8x1xf32>
    %c4 = arith.constant 4 : index
    %26 = memref.load %arg2[%c4] : memref<16xf32, #tpu.memory_space<smem>>
    %27 = vector.broadcast %26 : f32 to vector<8x256xf32>
    %28 = arith.mulf %0, %27 : vector<8x256xf32>
    %c5 = arith.constant 5 : index
    %29 = memref.load %arg2[%c5] : memref<16xf32, #tpu.memory_space<smem>>
    %30 = vector.broadcast %29 : f32 to vector<8x256xf32>
    %31 = arith.mulf %1, %30 : vector<8x256xf32>
    %32 = arith.addf %28, %31 : vector<8x256xf32>
    %c6 = arith.constant 6 : index
    %33 = memref.load %arg2[%c6] : memref<16xf32, #tpu.memory_space<smem>>
    %34 = vector.broadcast %33 : f32 to vector<8x256xf32>
    %35 = arith.mulf %2, %34 : vector<8x256xf32>
    %36 = arith.addf %32, %35 : vector<8x256xf32>
    %c7 = arith.constant 7 : index
    %37 = memref.load %arg2[%c7] : memref<16xf32, #tpu.memory_space<smem>>
    %38 = vector.broadcast %37 : f32 to vector<8x256xf32>
    %39 = arith.mulf %3, %38 : vector<8x256xf32>
    %40 = arith.addf %36, %39 : vector<8x256xf32>
    %c1_8 = arith.constant 1 : index
    %41 = memref.load %arg3[%c1_8] : memref<4xf32, #tpu.memory_space<smem>>
    %42 = vector.broadcast %41 : f32 to vector<8x256xf32>
    %43 = arith.addf %40, %42 : vector<8x256xf32>
    %c0_9 = arith.constant 0 : index
    %c256_10 = arith.constant 256 : index
    %44 = vector.load %arg5[%c0_9, %c256_10] : memref<8x1024xf32, #tpu.memory_space<vmem>>, vector<8x256xf32>
    tpu.vector_store %arg5[%c0_9, %c256_10], %43 {strides = array<i32>} : memref<8x1024xf32, #tpu.memory_space<vmem>>, vector<8x256xf32>,
    %45 = arith.mulf %43, %43 : vector<8x256xf32>
    %cst_11 = arith.constant dense<0.000000e+00> : vector<8xf32>
    %46 = vector.multi_reduction <add>, %45, %cst_11 [1] : vector<8x256xf32> to vector<8xf32>
    %47 = vector.shape_cast %46 : vector<8xf32> to vector<8x1xf32>
    %48 = arith.addf %25, %47 : vector<8x1xf32>
    %c8 = arith.constant 8 : index
    %49 = memref.load %arg2[%c8] : memref<16xf32, #tpu.memory_space<smem>>
    %50 = vector.broadcast %49 : f32 to vector<8x256xf32>
    %51 = arith.mulf %0, %50 : vector<8x256xf32>
    %c9 = arith.constant 9 : index
    %52 = memref.load %arg2[%c9] : memref<16xf32, #tpu.memory_space<smem>>
    %53 = vector.broadcast %52 : f32 to vector<8x256xf32>
    %54 = arith.mulf %1, %53 : vector<8x256xf32>
    %55 = arith.addf %51, %54 : vector<8x256xf32>
    %c10 = arith.constant 10 : index
    %56 = memref.load %arg2[%c10] : memref<16xf32, #tpu.memory_space<smem>>
    %57 = vector.broadcast %56 : f32 to vector<8x256xf32>
    %58 = arith.mulf %2, %57 : vector<8x256xf32>
    %59 = arith.addf %55, %58 : vector<8x256xf32>
    %c11 = arith.constant 11 : index
    %60 = memref.load %arg2[%c11] : memref<16xf32, #tpu.memory_space<smem>>
    %61 = vector.broadcast %60 : f32 to vector<8x256xf32>
    %62 = arith.mulf %3, %61 : vector<8x256xf32>
    %63 = arith.addf %59, %62 : vector<8x256xf32>
    %c2_12 = arith.constant 2 : index
    %64 = memref.load %arg3[%c2_12] : memref<4xf32, #tpu.memory_space<smem>>
    %65 = vector.broadcast %64 : f32 to vector<8x256xf32>
    %66 = arith.addf %63, %65 : vector<8x256xf32>
    %c0_13 = arith.constant 0 : index
    %c512_14 = arith.constant 512 : index
    %67 = vector.load %arg5[%c0_13, %c512_14] : memref<8x1024xf32, #tpu.memory_space<vmem>>, vector<8x256xf32>
    tpu.vector_store %arg5[%c0_13, %c512_14], %66 {strides = array<i32>} : memref<8x1024xf32, #tpu.memory_space<vmem>>, vector<8x256xf32>,
    %68 = arith.mulf %66, %66 : vector<8x256xf32>
    %cst_15 = arith.constant dense<0.000000e+00> : vector<8xf32>
    %69 = vector.multi_reduction <add>, %68, %cst_15 [1] : vector<8x256xf32> to vector<8xf32>
    %70 = vector.shape_cast %69 : vector<8xf32> to vector<8x1xf32>
    %71 = arith.addf %48, %70 : vector<8x1xf32>
    %c12 = arith.constant 12 : index
    %72 = memref.load %arg2[%c12] : memref<16xf32, #tpu.memory_space<smem>>
    %73 = vector.broadcast %72 : f32 to vector<8x256xf32>
    %74 = arith.mulf %0, %73 : vector<8x256xf32>
    %c13 = arith.constant 13 : index
    %75 = memref.load %arg2[%c13] : memref<16xf32, #tpu.memory_space<smem>>
    %76 = vector.broadcast %75 : f32 to vector<8x256xf32>
    %77 = arith.mulf %1, %76 : vector<8x256xf32>
    %78 = arith.addf %74, %77 : vector<8x256xf32>
    %c14 = arith.constant 14 : index
    %79 = memref.load %arg2[%c14] : memref<16xf32, #tpu.memory_space<smem>>
    %80 = vector.broadcast %79 : f32 to vector<8x256xf32>
    %81 = arith.mulf %2, %80 : vector<8x256xf32>
    %82 = arith.addf %78, %81 : vector<8x256xf32>
    %c15 = arith.constant 15 : index
    %83 = memref.load %arg2[%c15] : memref<16xf32, #tpu.memory_space<smem>>
    %84 = vector.broadcast %83 : f32 to vector<8x256xf32>
    %85 = arith.mulf %3, %84 : vector<8x256xf32>
    %86 = arith.addf %82, %85 : vector<8x256xf32>
    %c3_16 = arith.constant 3 : index
    %87 = memref.load %arg3[%c3_16] : memref<4xf32, #tpu.memory_space<smem>>
    %88 = vector.broadcast %87 : f32 to vector<8x256xf32>
    %89 = arith.addf %86, %88 : vector<8x256xf32>
    %c0_17 = arith.constant 0 : index
    %c768_18 = arith.constant 768 : index
    %90 = vector.load %arg5[%c0_17, %c768_18] : memref<8x1024xf32, #tpu.memory_space<vmem>>, vector<8x256xf32>
    tpu.vector_store %arg5[%c0_17, %c768_18], %89 {strides = array<i32>} : memref<8x1024xf32, #tpu.memory_space<vmem>>, vector<8x256xf32>,
    %91 = arith.mulf %89, %89 : vector<8x256xf32>
    %cst_19 = arith.constant dense<0.000000e+00> : vector<8xf32>
    %92 = vector.multi_reduction <add>, %91, %cst_19 [1] : vector<8x256xf32> to vector<8xf32>
    %93 = vector.shape_cast %92 : vector<8xf32> to vector<8x1xf32>
    %94 = arith.addf %71, %93 : vector<8x1xf32>
    %c0_20 = arith.constant 0 : index
    %95 = memref.load %arg4[%c0_20] : memref<1xf32, #tpu.memory_space<smem>>
    %cst_21 = arith.constant 5.000000e-01 : f32
    %96 = vector.broadcast %cst_21 : f32 to vector<8x1xf32>
    %97 = arith.mulf %96, %94 : vector<8x1xf32>
    %98 = vector.broadcast %95 : f32 to vector<8x1xf32>
    %99 = arith.subf %98, %97 : vector<8x1xf32>
    %c0_22 = arith.constant 0 : index
    %c0_23 = arith.constant 0 : index
    %100 = vector.load %arg6[%c0_22, %c0_23] : memref<8x1xf32, #tpu.memory_space<vmem>>, vector<8x1xf32>
    tpu.vector_store %arg6[%c0_22, %c0_23], %99 {strides = array<i32>} : memref<8x1xf32, #tpu.memory_space<vmem>>, vector<8x1xf32>,
    return
  }
  func.func @transform_0(%arg0: i32) -> (i32, i32) {
    %c0_i32 = arith.constant 0 : i32
    %c0_i32_0 = arith.constant 0 : i32
    return %arg0, %c0_i32 : i32, i32
  }
  func.func @transform_1(%arg0: i32) -> i32 {
    %c0_i32 = arith.constant 0 : i32
    %c0_i32_0 = arith.constant 0 : i32
    return %c0_i32 : i32
  }
  func.func @transform_2(%arg0: i32) -> i32 {
    %c0_i32 = arith.constant 0 : i32
    %c0_i32_0 = arith.constant 0 : i32
    return %c0_i32 : i32
  }
  func.func @transform_3(%arg0: i32) -> i32 {
    %c0_i32 = arith.constant 0 : i32
    %c0_i32_0 = arith.constant 0 : i32
    return %c0_i32 : i32
  }
  func.func @transform_4(%arg0: i32) -> (i32, i32) {
    %c0_i32 = arith.constant 0 : i32
    %c0_i32_0 = arith.constant 0 : i32
    return %arg0, %c0_i32 : i32, i32
  }
  func.func @transform_5(%arg0: i32) -> (i32, i32) {
    %c0_i32 = arith.constant 0 : i32
    %c0_i32_0 = arith.constant 0 : i32
    return %arg0, %c0_i32 : i32, i32
  }
}

</mosaic_0001>

<bundles_post_ra>
// kernel: tpu_custom_call.1
= control target key start
LH: loop header
LB: loop body
LE: loop exit
PB: predicated region body
PF: predicated region fallthrough
CT: control target
= control target key end

     0   :  { %s1145_s0 = inlined_call_operand.hbm [shape: f32[16,1024], index: 0, kind: input, shape index: {}]   ;;  %s1146_s1 = inlined_call_operand.vmem [shape: f32[16], index: 1, kind: input, shape index: {}]   ;;  %s1147_s2 = inlined_call_operand.vmem [shape: f32[4], index: 2, kind: input, shape index: {}]   ;;  %s1148_s3 = inlined_call_operand.<no memory space> [shape: f32[1], index: 3, kind: input, shape index: {}]   ;;  %s1149_s4 = inlined_call_operand.hbm [shape: f32[16,1024], index: 4, kind: output, shape index: {0}]   ;;  %s1150_s5 = inlined_call_operand.vmem [shape: f32[16,1], index: 5, kind: output, shape index: {1}]  }
   0x1   :  { %11 = sst [smem:[#allocation2]] %s1148_s3 }
   0x2   :  { %12 = vsyncpa [#allocation4], 0 }
   0x3   :  { %14 = vsyncpa [#allocation4 + $0x1], 0 }
   0x4   :  { %15 = vsyncpa [#allocation6], 0 }
   0x5   :  { %16 = vsyncpa [#allocation9], 0 }
   0x6   :  { %17 = vsyncpa [#allocation5], 0 }
   0x7   :  { %19 = vsyncpa [#allocation5 + $0x1], 0  ;;  %s846_s20 = smov 0   ;;  %s848_s21 = smov 0  }
   0x8   :  { %s850_s22 = smov 0   ;;  %s852_s23 = smov 0  }
   0x9 LB: > { %s867_s3 = sadd.s32 4294967295, %s807_s23   ;;  %s567_s24 = sadd.s32 4294967294, %s807_s23   ;;  %s807_s23 = sphi %s852_s23, %s1172_s23   ;;  %s803_s22 = sphi %s850_s22, %s1171_s22   ;;  %s799_s21 = sphi %s848_s21, %s1170_s21   ;;  %s795_s20 = sphi %s846_s20, %s1169_s20  }
   0xa   : > { %p45_p0 = scmp.ne.s32.totalorder %s799_s21, %s795_s20  ;;  %p1151_p1 = scmp.eq.s32.totalorder %s867_s3, 0 }
   0xb   : > { %p138_p3 = scmp.eq.s32.totalorder %s567_s24, 1  ;;  %p568_p5 = scmp.ge.s32.totalorder %s807_s23, 1 }
   0xc   : > { %p876_p4 = por %p1151_p1, %p45_p0  ;;  %p171_p7 = scmp.lt.s32.totalorder %s807_s23, 3 }
   0xd   : > { %p881_p6 = por %p138_p3, %p45_p0  ;;  %s184_s29 = sshll.u32 %s1146_s1, 4  ;;  %s185_s29 = int_to_ptr.vmem [resolvable:$true] %s184_s29 }
   0xe   : > { %s1154_s25 = scalar_select %p876_p4, 1, 0 }
   0xf   : > { %s1155_s26 = scalar_select %p881_p6, 1, 0 }
  0x10   : > { %p889_p8 = pnand %p568_p5, %p171_p7  ;;  %s195_s8 = sshll.u32 %s1147_s2, 4  ;;  %s196_s8 = int_to_ptr.vmem [resolvable:$true] %s195_s8 }
  0x11   : > { %s906_s10 = sadd.s32 1, %s807_s23   ;;  %s673_s12 = scalar_lea.vmem %s185_s29, 16 }
  0x12   : > { %s1156_s30 = scalar_select %p889_p8, 1, 0 }
  0x13   : > { %p618_p10 = pneg %p889_p8  ;;  %s29_s11 = ssub.s32 %s807_s23, %s906_s10 }
  0x14   : > { %p674_p12 = scmp.ne.s32.totalorder %s185_s29, %s673_s12  ;;  %p681_p5 = scmp.lt.s32.totalorder %s185_s29, %s185_s29 }
  0x15   : > { %p901_p11 = pnand %p618_p10, %p1151_p1  ;;  %p682_p7 = scmp.lt.s32.totalorder %s673_s12, %s673_s12 }
  0x17   : > { %p675_p13 = pneg %p901_p11  ;;  %p683_p9 = por %p682_p7, %p681_p5 }
  0x19   : > { %p676_p0 = pnand %p675_p13, %p674_p12 }
  0x1b   : > { %p677_p3 = pneg %p676_p0 }
  0x1d   : > { %p684_p2 = pnand %p683_p9, %p677_p3 }
  0x1f   : > { %687 = shalt.err (!%p684_p2)
}
  0x20   : > { %s809_s13 = smov [#allocation7]   ;;  %s688_s14 = scalar_lea.vmem %s196_s8, 16 }
  0x21   : > { %621 = dma.vmem_to_smem (!%p901_p11), %s185_s29, 16, %s809_s13, [#allocation6]  }
  0x22   : > { %p689_p10 = scmp.ne.s32.totalorder %s196_s8, %s688_s14  ;;  %p696_p4 = scmp.lt.s32.totalorder %s196_s8, %s196_s8 }
  0x23   : > { %p697_p8 = scmp.lt.s32.totalorder %s688_s14, %s688_s14 }
  0x24   : > { %p691_p1 = pnand %p689_p10, %p675_p13 }
  0x25   : > { %p698_p12 = por %p697_p8, %p696_p4 }
  0x26   : > { %p692_p6 = pneg %p691_p1 }
  0x28   : > { %p699_p0 = pnand %p698_p12, %p692_p6 }
  0x2a   : > { %702 = shalt.err (!%p699_p0)
}
  0x2b   : > { %s810_s15 = smov [#allocation8]   ;;  %p30_p2 = scmp.eq.s32.totalorder %s29_s11, 0 }
  0x2c   : > { %624 = dma.vmem_to_smem (!%p901_p11), %s196_s8, 16, %s810_s15, [#allocation9]  }
  0x2d   : > { %s32_s16 = sadd.s32 1, %s803_s22  ;;  %p39_p1 = scmp.ne.s32.totalorder %s803_s22, %s799_s21 }
  0x2e   : > { %p40_p9 = scmp.eq.s32.totalorder %s807_s23, 0  ;;  %p1158_p6 = scmp.eq.s32.totalorder %s867_s3, 1 }
  0x2f   : > { %s921_s17 = scalar_select %p30_p2, %s803_s22, %s32_s16  }
  0x30   : > { %p41_p4 = por %p40_p9, %p39_p1  ;;  %p925_p8 = por %p1158_p6, %p39_p1 }
  0x31   : > { %p635_p13 = scmp.lt.s32.totalorder %s807_s23, 2  ;;  %s209_s19 = sand.u32 1, %s803_s22  }
  0x32   : > { %s572_s24 = sshll.u32 %s209_s19, 6  ;;  %s604_s27 = sshll.u32 %s807_s23, 10 }
  0x33   : > { %s935_s6 = scalar_lea.hbm %s1145_s0, %s604_s27  ;;  %s213_s7 = scalar_lea.vmem [#allocation3], %s572_s24 }
  0x34   : > { %s221_s8 = sshll.u32 %s213_s7, 4  ;;  %p939_p11 = pnand %p635_p13, %p41_p4  ;;  %s937_s8 = int_to_ptr.vmem [resolvable:$true] %s221_s8 }
  0x35   : > { %s210_s11 = scalar_lea.sflag [#allocation4], %s209_s19  ;;  %s703_s12 = scalar_lea.hbm %s935_s6, 1024 }
  0x36   : > { %p704_p3 = scmp.ne.s32.totalorder %s935_s6, %s703_s12  ;;  %p705_p5 = pneg %p939_p11 }
  0x37   : > { %s708_s15 = scalar_lea.hbm %s1145_s0, 2048  ;;  %p709_p12 = scmp.lt.u32.totalorder %s935_s6, %s1145_s0 }
  0x38   : > { %p706_p7 = pnand %p705_p5, %p704_p3  ;;  %p710_p0 = scmp.lt.u32.totalorder %s708_s15, %s703_s12 }
  0x39   : > { %p712_p1 = scmp.lt.u32.totalorder %s703_s12, %s935_s6 }
  0x3a   : > { %p707_p10 = pneg %p706_p7  ;;  %p711_p2 = por %p710_p0, %p709_p12 }
  0x3c   : > { %p713_p9 = por %p712_p1, %p711_p2 }
  0x3e   : > { %p714_p4 = pnand %p713_p9, %p707_p10 }
  0x40   : > { %717 = shalt.err (!%p714_p4)
}
  0x41   : > { %s718_s19 = scalar_lea.vmem %s937_s8, 1024  ;;  %s811_s27 = smov [#allocation3]  }
  0x42   : > { %p719_p6 = scmp.ne.s32.totalorder %s937_s8, %s718_s19  ;;  %s723_s28 = sshll.u32 %s811_s27, 4  ;;  %s724_s28 = int_to_ptr.vmem [resolvable:$false] %s723_s28 }
  0x43   : > { %s725_s29 = scalar_lea.vmem %s724_s28, 2048  ;;  %p726_p7 = scmp.lt.s32.totalorder %s937_s8, %s724_s28 }
  0x44   : > { %p721_p13 = pnand %p719_p6, %p705_p5  ;;  %p727_p12 = scmp.lt.s32.totalorder %s725_s29, %s718_s19 }
  0x46   : > { %p722_p3 = pneg %p721_p13  ;;  %p728_p0 = por %p727_p12, %p726_p7 }
  0x48   : > { %p729_p2 = pnand %p728_p0, %p722_p3 }
  0x4a   : > { %732 = shalt.err (!%p729_p2)
}
  0x4b   : > { %628 = dma.hbm_to_vmem [thread:$0]  (!%p939_p11), %s935_s6, 1024, %s937_s8, %s210_s11  }
  0x4c   : > { %p1161_p10 = scmp.ne.s32.totalorder %s1156_s30, 0 }
  0x4d   : > { %s971_s7 = sand.u32 (!%p1161_p10), 1, %s799_s21   ;;  %p1162_p5 = scmp.ne.s32.totalorder (!%p1161_p10), %s1154_s25, 0 }
  0x4e   : > { %230 = sbr.rel (%p1161_p10) target bundleno = 282 (0x11a), region = 36  ;;  %s576_s12 = sshll.u32 (!%p1161_p10), %s971_s7, 6 }
  0x4f   : > { %s233_s13 = scalar_lea.sflag (!%p1161_p10), [#allocation4], %s971_s7  ;;  %s236_s14 = scalar_lea.vmem (!%p1161_p10), [#allocation3], %s576_s12 }
  0x55   : > { %778 = dma.done.wait (%p1162_p5), %s233_s13, 1024  }
  0x56   : > { %780 = vsyncadd (%p1162_p5), %s233_s13, 4294966272  ;;  %p1163_p11 = scmp.eq.s32.totalorder %s867_s3, 0 }
  0x58   : > { %782 = dma.done.wait (%p1163_p11), [#allocation6], 16   ;;  %p1164_p1 = pmov %p1163_p11 }
  0x5a   : > { %784 = vsyncadd (%p1164_p1), [#allocation6], 4294967280  ;;  %p1165_p9 = pmov %p1164_p1 }
  0x5b   : > { %p1166_p4 = pmov %p1164_p1 }
  0x5c   : > { %786 = dma.done.wait (%p1165_p9), [#allocation9], 16  }
  0x5d   : > { %788 = vsyncadd (%p1166_p4), [#allocation9], 4294967280 }
  0x5e   : > { %249 = sfence }
  0x5f   : > { %s288_s30 = sld [smem:[#allocation7]]  ;;  %s581_s6 = sld [smem:[#allocation7 + $0x1]]  ;;  %v989_v0 = vld [vmem:[%s236_s14] sm:$0xff]  ;;  %v995_v1 = vld [vmem:[%s236_s14 + $0x8] sm:$0xff]  ;;  %v997_v2 = vld [vmem:[%s236_s14 + $0x10] sm:$0xff] }
  0x60   : > { %s582_s8 = sld [smem:[#allocation7 + $0x2]]  ;;  %s583_s9 = sld [smem:[#allocation7 + $0x3]]  ;;  %v1003_v3 = vld [vmem:[%s236_s14 + $0x18] sm:$0xff]  ;;  %v1005_v4 = vld [vmem:[%s236_s14 + $0x20] sm:$0xff]  ;;  %v1011_v5 = vld [vmem:[%s236_s14 + $0x28] sm:$0xff] }
  0x61   : > { %s991_s25 = sld [smem:[#allocation8]]  ;;  %s999_s15 = sld [smem:[#allocation7 + $0x9]]  ;;  %v1013_v6 = vld [vmem:[%s236_s14 + $0x30] sm:$0xff]  ;;  %v1015_v7 = vld [vmem:[%s236_s14 + $0x38] sm:$0xff] }
  0x62   : > { %s993_s11 = sld [smem:[#allocation7 + $0x8]]  ;;  %s1001_s16 = sld [smem:[#allocation7 + $0xa]] }
  0x63   : > { %s1007_s24 = sld [smem:[#allocation7 + $0xb]]  ;;  %s1009_s19 = sld [smem:[#allocation8 + $0x2]] }
  0x64   : > { %s1019_s27 = sld [smem:[#allocation7 + $0x4]]  ;;  %s1021_s28 = sld [smem:[#allocation7 + $0x5]] }
  0x65   : > { %v289_v8 = vstv %s288_s30  ;;  %v293_v11 = vstv %s581_s6  ;;  %s1035_s29 = sld [smem:[#allocation7 + $0x6]]  ;;  %s1037_s13 = sld [smem:[#allocation7 + $0x7]] }
  0x66   : > { %v290_v9 = vmul.f32 %v289_v8, %v989_v0  ;;  %v291_v10 = vmul.f32 %v289_v8, %v995_v1  ;;  %v294_v12 = vmul.f32 %v293_v11, %v997_v2  ;;  %v295_v13 = vmul.f32 %v293_v11, %v1003_v3  ;;  %s1045_s14 = sld [smem:[#allocation8 + $0x1]]  ;;  %s1047_s30 = sld [smem:[#allocation7 + $0xc]] }
  0x67   : > { %v299_v14 = vstv %s582_s8  ;;  %v305_v15 = vstv %s583_s9  ;;  %v311_v22 = vstv %s991_s25  ;;  %v360_v26 = vstv %s999_s15  ;;  %s1053_s6 = sld [smem:[#allocation7 + $0xd]]  ;;  %s1059_s8 = sld [smem:[#allocation7 + $0xe]] }
  0x68   : > { %v300_v16 = vmul.f32 %v299_v14, %v1005_v4  ;;  %v301_v17 = vmul.f32 %v299_v14, %v1011_v5  ;;  %v306_v18 = vmul.f32 %v305_v15, %v1013_v6  ;;  %v307_v19 = vmul.f32 %v305_v15, %v1015_v7  ;;  %s1061_s9 = sld [smem:[#allocation7 + $0xf]]  ;;  %s1065_s25 = scalar_lea.vmem [#allocation10], %s576_s12 }
  0x69   : > { %v296_v20 = vadd.f32 %v294_v12, %v290_v9  ;;  %v297_v21 = vadd.f32 %v295_v13, %v291_v10  ;;  %v356_v23 = vstv %s993_s11  ;;  %v366_v27 = vstv %s1001_s16  ;;  %s1076_s12 = sld [smem:[#allocation8 + $0x3]]  ;;  %s605_s11 = sshll.u32 %s867_s3, 10 }
  0x6a   : > { %v357_v24 = vmul.f32 %v356_v23, %v989_v0  ;;  %v358_v25 = vmul.f32 %v356_v23, %v995_v1  ;;  %v361_v30 = vmul.f32 %v360_v26, %v997_v2  ;;  %v362_v31 = vmul.f32 %v360_v26, %v1003_v3 }
  0x6b   : > { %v302_v28 = vadd.f32 %v300_v16, %v296_v20  ;;  %v303_v29 = vadd.f32 %v301_v17, %v297_v21  ;;  %v367_v32 = vmul.f32 %v366_v27, %v1005_v4  ;;  %v368_v33 = vmul.f32 %v366_v27, %v1011_v5 }
  0x6c   : > { %v372_v34 = vstv %s1007_s24  ;;  %v378_v35 = vstv %s1009_s19  ;;  %v363_v38 = vadd.f32 %v361_v30, %v357_v24  ;;  %v364_v39 = vadd.f32 %v362_v31, %v358_v25  ;;  %s1101_s24 = scalar_lea.hbm %s1149_s4, %s605_s11  ;;  %s448_s19 = sshll.u32 %s1065_s25, 4  ;;  %s449_s19 = int_to_ptr.vmem [resolvable:$true] %s448_s19 }
  0x6d   : > { %v308_v36 = vadd.f32 %v306_v18, %v302_v28  ;;  %v309_v37 = vadd.f32 %v307_v19, %v303_v29  ;;  %v373_v40 = vmul.f32 %v372_v34, %v1013_v6  ;;  %v374_v41 = vmul.f32 %v372_v34, %v1015_v7 }
  0x6e   : > { %v322_v42 = vstv %s1019_s27  ;;  %v326_v43 = vstv %s1021_s28  ;;  %v369_v46 = vadd.f32 %v367_v32, %v363_v38  ;;  %v370_v47 = vadd.f32 %v368_v33, %v364_v39  ;;  %s430_s27 = scalar_lea.sflag [#allocation5], %s971_s7  ;;  %s733_s28 = scalar_lea.vmem %s449_s19, 1024 }
  0x6f   : > { %v312_v44 = vadd.f32 %v311_v22, %v308_v36  ;;  %v313_v45 = vadd.f32 %v311_v22, %v309_v37  ;;  %v323_v48 = vmul.f32 %v322_v42, %v989_v0  ;;  %v324_v49 = vmul.f32 %v322_v42, %v995_v1  ;;  %p734_p6 = scmp.ne.s32.totalorder %s449_s19, %s733_s28 }
  0x70   : > { %v327_v50 = vmul.f32 %v326_v43, %v997_v2  ;;  %v328_v51 = vmul.f32 %v326_v43, %v1003_v3  ;;  %v375_v54 = vadd.f32 %v373_v40, %v369_v46  ;;  %v376_v55 = vadd.f32 %v374_v41, %v370_v47 }
  0x71   : > { %v316_v52 = vmul.f32 %v312_v44, %v312_v44  ;;  %v317_v53 = vmul.f32 %v313_v45, %v313_v45  ;;  %314 = vst [vmem:[%s1065_s25] sm:$0xff] %v312_v44  ;;  %315 = vst [vmem:[%s1065_s25 + $0x8] sm:$0xff] %v313_v45  ;;  %v332_v58 = vstv %s1035_s29  ;;  %v338_v59 = vstv %s1037_s13  ;;  %p735_p13 = pnand %p734_p6, %p925_p8  ;;  %s812_s29 = smov [#allocation10]  }
  0x72   : > { %v329_v56 = vadd.f32 %v327_v50, %v323_v48  ;;  %v330_v57 = vadd.f32 %v328_v51, %v324_v49  ;;  %v379_v61 = vadd.f32 %v378_v35, %v375_v54  ;;  %v380_v62 = vadd.f32 %v378_v35, %v376_v55  ;;  %s737_s13 = sshll.u32 %s812_s29, 4  ;;  %s738_s13 = int_to_ptr.vmem [resolvable:$false] %s737_s13 }
  0x73   : > { %v318_v60 = vadd.f32 %v317_v53, %v316_v52  ;;  %v333_v63 = vmul.f32 %v332_v58, %v1005_v4  ;;  %v334_v8 = vmul.f32 %v332_v58, %v1011_v5  ;;  %v339_v9 = vmul.f32 %v338_v59, %v1013_v6  ;;  %p736_p3 = pneg %p735_p13  ;;  %p740_p7 = scmp.lt.s32.totalorder %s449_s19, %s738_s13 }
  0x74   : > { %v340_v10 = vmul.f32 %v338_v59, %v1015_v7  ;;  %v344_v11 = vstv %s1045_s14  ;;  %v383_v12 = vmul.f32 %v379_v61, %v379_v61  ;;  %v384_v13 = vmul.f32 %v380_v62, %v380_v62  ;;  %381 = vst [vmem:[%s1065_s25 + $0x20] sm:$0xff] %v379_v61  ;;  %382 = vst [vmem:[%s1065_s25 + $0x28] sm:$0xff] %v380_v62  ;;  %s739_s14 = scalar_lea.vmem %s738_s13, 2048 }
  0x75   : > { %319 = vadd.xlane.f32.xlu0 %v318_v60  ;;  %v335_v14 = vadd.f32 %v333_v63, %v329_v56  ;;  %v390_v15 = vstv %s1047_s30  ;;  %v336_v16 = vadd.f32 %v334_v8, %v330_v57  ;;  %v394_v19 = vstv %s1053_s6  ;;  %p741_p12 = scmp.lt.s32.totalorder %s739_s14, %s733_s28 }
  0x76   : > { %v391_v17 = vmul.f32 %v390_v15, %v989_v0  ;;  %v392_v18 = vmul.f32 %v390_v15, %v995_v1  ;;  %v385_v20 = vadd.f32 %v384_v13, %v383_v12  ;;  %v395_v22 = vmul.f32 %v394_v19, %v997_v2 }
  0x77   : > { %v341_v21 = vadd.f32 %v339_v9, %v335_v14  ;;  %v396_v23 = vmul.f32 %v394_v19, %v1003_v3  ;;  %v342_v24 = vadd.f32 %v340_v10, %v336_v16  ;;  %v400_v25 = vstv %s1059_s8  ;;  %p742_p0 = por %p741_p12, %p740_p7 }
  0x78   : > { %v406_v26 = vstv %s1061_s9  ;;  %386 = vadd.xlane.f32.xlu1 %v385_v20  ;;  %v397_v28 = vadd.f32 %v395_v22, %v391_v17  ;;  %v401_v0 = vmul.f32 %v400_v25, %v1005_v4  ;;  %v402_v30 = vmul.f32 %v400_v25, %v1011_v5 }
  0x79   : > { %v345_v27 = vadd.f32 %v344_v11, %v341_v21  ;;  %v398_v29 = vadd.f32 %v396_v23, %v392_v18  ;;  %v346_v1 = vadd.f32 %v344_v11, %v342_v24  ;;  %v407_v31 = vmul.f32 %v406_v26, %v1013_v6  ;;  %p743_p2 = pnand %p742_p0, %p736_p3 }
  0x7a   : > { %v408_v2 = vmul.f32 %v406_v26, %v1015_v7  ;;  %v403_v32 = vadd.f32 %v401_v0, %v397_v28  ;;  %v412_v35 = vstv %s1076_s12 }
  0x7b   : > { %v349_v3 = vmul.f32 %v345_v27, %v345_v27  ;;  %347 = vst [vmem:[%s1065_s25 + $0x10] sm:$0xff] %v345_v27  ;;  %v350_v33 = vmul.f32 %v346_v1, %v346_v1  ;;  %348 = vst [vmem:[%s1065_s25 + $0x18] sm:$0xff] %v346_v1  ;;  %v404_v34 = vadd.f32 %v402_v30, %v398_v29 }
  0x7c   : > { %v409_v36 = vadd.f32 %v407_v31, %v403_v32 }
  0x7d   : > { %v351_v4 = vadd.f32 %v350_v33, %v349_v3  ;;  %v410_v37 = vadd.f32 %v408_v2, %v404_v34 }
  0x7e   : > { %v413_v5 = vadd.f32 %v412_v35, %v409_v36 }
  0x7f   : > { %352 = vadd.xlane.f32.xlu0 %v351_v4  ;;  %v414_v6 = vadd.f32 %v412_v35, %v410_v37 }
  0x80   : > { %v417_v38 = vmul.f32 %v413_v5, %v413_v5  ;;  %415 = vst [vmem:[%s1065_s25 + $0x30] sm:$0xff] %v413_v5 }
  0x81   : > { %v418_v7 = vmul.f32 %v414_v6, %v414_v6  ;;  %416 = vst [vmem:[%s1065_s25 + $0x38] sm:$0xff] %v414_v6 }
  0x83   : > { %v419_v39 = vadd.f32 %v418_v7, %v417_v38 }
  0x85   : > { %420 = vadd.xlane.f32.xlu1 %v419_v39 }
  0x86   : > { %746 = shalt.err (!%p743_p2)
}
  0x87   : > { %s747_s7 = scalar_lea.hbm %s1101_s24, 1024  ;;  %s751_s8 = scalar_lea.hbm %s1149_s4, 2048 }
  0x88   : > { %p748_p10 = scmp.ne.s32.totalorder %s1101_s24, %s747_s7  ;;  %p752_p1 = scmp.lt.u32.totalorder %s1101_s24, %s1149_s4 }
  0x89   : > { %p753_p9 = scmp.lt.u32.totalorder %s751_s8, %s747_s7  ;;  %p755_p6 = scmp.lt.u32.totalorder %s747_s7, %s1101_s24 }
  0x8a   : > { %p749_p5 = pnand %p748_p10, %p925_p8 }
  0x8b   : > { %p754_p4 = por %p753_p9, %p752_p1 }
  0x8c   : > { %p750_p11 = pneg %p749_p5 }
  0x8d   : > { %p756_p13 = por %p755_p6, %p754_p4 }
  0x8f   : > { %p757_p3 = pnand %p756_p13, %p750_p11 }
  0x91   : > { %760 = shalt.err (!%p757_p3)
}
  0x92   : > { %616 = dma.vmem_to_hbm [thread:$0]  (%p925_p8), %s449_s19, 1024, %s1101_s24, %s430_s27   ;;  %vm427_vm0 = vcmask 7168  }
  0x93   : > { %p276_p7 = scmp.lt.s32.totalorder %s867_s3, 1  ;;  %s423_s12 = sld [smem:[#allocation2]] }
  0x95   : > { %s1174_s3 = smov (!%p276_p7, %s867_s3), 1 }
  0x96   : > { %s580_s11 = sshll.u32 %s1174_s3, 3 }
  0x97   : > { %s279_s16 = scalar_lea.vmem %s1150_s5, %s580_s11 }
  0x99   : > { %v425_v47 = vstv %s423_s12 }
 0x102   : > { %v320_v40 = vpop.xlane.xlu0 %319 }
 0x105   : > { %v387_v41 = vpop.xlane.xlu1 %386 }
 0x10c   : > { %v353_v42 = vpop.xlane.xlu0 %352 }
 0x10d   : > { %v354_v43 = vadd.f32 %v353_v42, %v320_v40 }
 0x10f   : > { %v388_v44 = vadd.f32 %v387_v41, %v354_v43 }
 0x112   : > { %v421_v45 = vpop.xlane.xlu1 %420 }
 0x113   : > { %v422_v46 = vadd.f32 %v421_v45, %v388_v44 }
 0x115   : > { %v424_v48 = vmul.f32 0.5, %v422_v46 }
 0x117   : > { %v426_v49 = vsub.f32 %v425_v47, %v424_v48 }
 0x119   : > { %428 = vst.msk [vmem:[%s279_s16] sm:$0xff] %vm427_vm0, %v426_v49 }
 0x11a PF: > { %s463_s24 = sand.u32 1, %s795_s20   ;;  %p1167_p8 = scmp.ne.s32.totalorder %s1155_s26, 0 }
 0x11b   : > { %p1168_p12 = scmp.ge.s32.totalorder %s807_s23, 2  ;;  %s464_s19 = scalar_lea.sflag [#allocation5], %s463_s24 }
 0x11d   : > { %p630_p0 = pnand %p1168_p12, %p1167_p8 }
 0x11f   : > { %790 = dma.done.wait (!%p630_p0), %s464_s19, 1024  }
 0x120   : > { %792 = vsyncadd (!%p630_p0), %s464_s19, 4294966272  ;;  %p22_p2 = scmp.ge.s32.totalorder %s906_s10, 4   ;;  %s1169_s20 = smov %s799_s21 }
 0x121   : > { %s1170_s21 = smov %s803_s22  ;;  %s1171_s22 = smov %s921_s17 }
 0x122   : > { %s1172_s23 = smov %s906_s10  ;;  %24 = sbr.rel (!%p22_p2) target bundleno = 9 (0x9), region = 102 }
 0x129   :  { %476 = vsyncpa [#allocation4], 1 }
 0x12a   :  { %478 = vsyncpa [#allocation4 + $0x1], 1 }
 0x12b   :  { %479 = vsyncpa [#allocation5], 1 }
 0x12c   :  { %481 = vsyncpa [#allocation5 + $0x1], 1 }
 0x12d   :  { %482 = vsyncpa [#allocation6], 1 }
 0x12e   :  { %484 = vsyncpa [#allocation6 + $0x1], 1 }
 0x12f   :  { %485 = vsyncpa [#allocation9], 1 }

</bundles_post_ra>
